<compile_context>
chip_gen: v7x
topology: tpu7x:2x2x1
jax: 0.10.0
libtpu: 0.0.40
codegen_flags: <defaults>
</compile_context>

<pallas_src>
import functools

import jax
import jax.numpy as jnp
from jax.experimental import pallas as pl
from jax.experimental.pallas import tpu as pltpu


# ------------------ fused kernel: conv matmul + BN stats + BN/ReLU + 2x2 max-pool ---------------
def _convlayer_fused_kernel(lhs_ref, wt_ref, gam_ref, bet_ref, p_ref, out_ref, *,
                            inv_count, eps, pool):
    # lhs_ref : (M, K)   stacked / H-shifted input rows   (M = N*Ho, K = kh*Wp*Cin)
    # wt_ref  : (K, L)   banded conv weight               (L = Wo*Cout, lane-dense)
    # gam_ref : (1, L)   gamma tiled per output lane (f32)
    # bet_ref : (1, L)   beta  tiled per output lane (f32)
    # p_ref   : (L, L)   channel-aggregation matrix (f32): P[i, j] = (i % Cout == j % Cout)
    # out_ref : (M//2, L//2) if pool else (M, L)
    acc = jnp.dot(lhs_ref[...], wt_ref[...], preferred_element_type=jnp.float32)   # (M, L) f32

    # --- BN batch statistics, fully in-kernel (training-mode BN: biased variance) ---
    # Per-lane sums/ssq over all rows, then one tiny matmul aggregates lanes per channel and
    # broadcasts the per-channel totals back to every lane (layout stays 128-lane dense).
    sq = jnp.concatenate([jnp.sum(acc, axis=0, keepdims=True),
                          jnp.sum(acc * acc, axis=0, keepdims=True)], axis=0)       # (2, L)
    ch = jnp.dot(sq, p_ref[...], preferred_element_type=jnp.float32)                # (2, L)
    mean = ch[0:1, :] * inv_count
    var = ch[1:2, :] * inv_count - mean * mean          # single-pass E[x^2]-E[x]^2 (see notes)
    scale = gam_ref[...] * jax.lax.rsqrt(var + eps)
    shift = bet_ref[...] - mean * scale

    v = jnp.maximum(acc * scale + shift, 0.0)            # BN affine + ReLU, (M, L)

    if pool:
        m, l = v.shape
        # W-pool: weight columns were permuted (even W positions first, then odd), so the
        # 2x1 max along W is just a max of the two 64-lane halves.
        wmax = jnp.maximum(v[:, : l // 2], v[:, l // 2:])
        # H-pool: LHS rows were ordered even-H-rows first, then odd, so the 2x1 max along H is
        # a max of the two (aligned, contiguous) row halves.
        out_ref[...] = jnp.maximum(wmax[: m // 2, :], wmax[m // 2:, :])
    else:
        out_ref[...] = v


@functools.partial(jax.jit, static_argnames=("padding", "maxpool", "eps", "matmul_dtype"))
def conv_layer_forward(x_nchw, weight, bias, gamma, beta, *, padding, maxpool=True,
                       eps=1e-5, matmul_dtype=jnp.bfloat16):
    """Forward pass matching PyTorch ConvLayer (fresh module => BN uses batch statistics)."""
    del bias  # Training-mode BN with batch statistics cancels the conv bias exactly.
    x_nchw = x_nchw.astype(jnp.float32)
    N, Cin, H, W = x_nchw.shape
    Cout, _, kh, kw = weight.shape
    Hp, Wp = H + 2 * padding, W + 2 * padding
    Ho, Wo = Hp - kh + 1, Wp - kw + 1
    K, L, M = kh * Wp * Cin, Wo * Cout, N * Ho

    if maxpool and ((Ho % 2) or (Wo % 2)):
        # TODO(synk): MaxPool2d floor-mode cropping for odd conv output dims not implemented.
        raise ValueError("maxpool path requires even conv output dims")

    # ---- glue: NCHW -> padded NHWC with (W, Cin) flattened onto the lane axis ----
    x = jnp.transpose(x_nchw, (0, 2, 3, 1))
    xp = jnp.pad(x, ((0, 0), (padding, padding), (padding, padding), (0, 0)))
    xr = xp.reshape(N, Hp, Wp * Cin)

    # ---- glue: LHS = concat of the kh H-shifted slices -> one matmul with K = kh*Wp*Cin ----
    lhs = jnp.concatenate([xr[:, di:di + Ho, :] for di in range(kh)], axis=-1)     # (N, Ho, K)
    if maxpool:
        # Order rows as (h-parity, n, h//2) so the in-kernel H-pool is a max of two row halves.
        lhs = lhs.reshape(N, Ho // 2, 2, K).transpose(2, 0, 1, 3)                  # (2, N, Hh, K)
    lhs = lhs.reshape(M, K).astype(matmul_dtype)

    # ---- glue: banded (Toeplitz) weight so the conv is a single lane-dense matmul ----
    # wt[di*Wp*Cin + p*Cin + ci, wo*Cout + co] = weight[co, ci, di, p - wo]  (0 outside kw band)
    # NOTE: this keeps K = kh*Wp*Cin (~Wp/kw mostly-zero columns).  Fine while Wp*Cin stays
    # within a couple of MXU K-passes; switch to true im2col (K = kh*kw*Cin) for wide images.
    w_perm = jnp.transpose(weight.astype(jnp.float32), (2, 3, 1, 0))               # (kh,kw,Cin,Cout)
    band = (jnp.arange(Wp)[None, :, None]
            == (jnp.arange(Wo)[None, None, :] + jnp.arange(kw)[:, None, None])
            ).astype(jnp.float32)                                                  # (kw, Wp, Wo)
    wt5 = jnp.einsum("jpw,hjio->hpiwo", band, w_perm)                              # (kh,Wp,Cin,Wo,Cout)
    if maxpool:
        # Permute output W positions (even first, then odd) so the in-kernel W-pool is a max of
        # the two 64-lane halves -- no narrow working sets, no lane gathers.
        w_order = jnp.concatenate([jnp.arange(0, Wo, 2), jnp.arange(1, Wo, 2)])
        wt5 = wt5[:, :, :, w_order, :]
    wt = wt5.reshape(K, L).astype(matmul_dtype)

    # ---- glue: lane-tiled BN affine params + channel-aggregation matrix (both tiny, f32) ----
    gamma_t = jnp.tile(gamma.astype(jnp.float32), Wo).reshape(1, L)
    beta_t = jnp.tile(beta.astype(jnp.float32), Wo).reshape(1, L)
    lane = jnp.arange(L)
    p_mat = (lane[:, None] % Cout == lane[None, :] % Cout).astype(jnp.float32)     # (L, L)

    if maxpool:
        out_shape = jax.ShapeDtypeStruct((M // 2, L // 2), jnp.float32)
    else:
        out_shape = jax.ShapeDtypeStruct((M, L), jnp.float32)

    kernel = functools.partial(_convlayer_fused_kernel,
                               inv_count=1.0 / float(N * Ho * Wo),
                               eps=float(eps), pool=maxpool)

    out_k = pl.pallas_call(
        kernel,
        out_shape=out_shape,
        grid_spec=pltpu.PrefetchScalarGridSpec(
            num_scalar_prefetch=0,
            grid=(1,),
            in_specs=[
                pl.BlockSpec((M, K), lambda i: (0, 0)),
                pl.BlockSpec((K, L), lambda i: (0, 0)),
                pl.BlockSpec((1, L), lambda i: (0, 0)),
                pl.BlockSpec((1, L), lambda i: (0, 0)),
                pl.BlockSpec((L, L), lambda i: (0, 0)),
            ],
            out_specs=pl.BlockSpec(out_shape.shape, lambda i: (0, 0)),
        ),
        compiler_params=pltpu.CompilerParams(dimension_semantics=("arbitrary",)),
    )(lhs, wt, gamma_t, beta_t, p_mat)

    # ---- glue: unpack the packed (rows, lanes) layout and return NCHW ----
    if maxpool:
        out = out_k.reshape(N, Ho // 2, Wo // 2, Cout).transpose(0, 3, 1, 2)
    else:
        out = out_k.reshape(N, Ho, Wo, Cout).transpose(0, 3, 1, 2)
    return out


# ------------------ pure-JAX reference for a correctness check ----------------------------------
def _reference(x_nchw, weight, bias, gamma, beta, *, padding, maxpool=True, eps=1e-5):
    y = jax.lax.conv_general_dilated(
        x_nchw, weight, window_strides=(1, 1),
        padding=((padding, padding), (padding, padding)),
        dimension_numbers=("NCHW", "OIHW", "NCHW"),
    ) + bias.reshape(1, -1, 1, 1)
    mean = jnp.mean(y, axis=(0, 2, 3), keepdims=True)
    var = jnp.mean((y - mean) ** 2, axis=(0, 2, 3), keepdims=True)   # biased (training-mode BN)
    y = (y - mean) * jax.lax.rsqrt(var + eps) * gamma.reshape(1, -1, 1, 1) + beta.reshape(1, -1, 1, 1)
    y = jnp.maximum(y, 0.0)
    if maxpool:
        N, C, H, W = y.shape
        y = jnp.max(y.reshape(N, C, H // 2, 2, W // 2, 2), axis=(3, 5))
    return y


if __name__ == "__main__":
    # ConvLayer(cin=4, cout=8, ksize=3, padding=1, maxpool=True)
    N, CIN, COUT, H, W, KSIZE, PAD = 2, 4, 8, 16, 16, 3, 1

    key = jax.random.PRNGKey(0)
    kx, kw_, kb = jax.random.split(key, 3)
    x = jax.random.normal(kx, (N, CIN, H, W), dtype=jnp.float32)
    weight = 0.1 * jax.random.normal(kw_, (COUT, CIN, KSIZE, KSIZE), dtype=jnp.float32)
    bias = 0.1 * jax.random.normal(kb, (COUT,), dtype=jnp.float32)
    gamma = jnp.ones((COUT,), dtype=jnp.float32)   # PyTorch BatchNorm2d default init
    beta = jnp.zeros((COUT,), dtype=jnp.float32)

    ref_pool = _reference(x, weight, bias, gamma, beta, padding=PAD, maxpool=True)
    ref_nopool = _reference(x, weight, bias, gamma, beta, padding=PAD, maxpool=False)

    # Exact f32 matmul path: strict tolerance vs. the f32 reference (both maxpool variants).
    out = conv_layer_forward(x, weight, bias, gamma, beta, padding=PAD, maxpool=True,
                             matmul_dtype=jnp.float32)
    out = jax.block_until_ready(out)
    assert out.shape == (N, COUT, H // 2, W // 2), out.shape
    assert jnp.allclose(out, ref_pool, atol=1e-4, rtol=1e-4), float(jnp.max(jnp.abs(out - ref_pool)))

    out2 = conv_layer_forward(x, weight, bias, gamma, beta, padding=PAD, maxpool=False,
                              matmul_dtype=jnp.float32)
    out2 = jax.block_until_ready(out2)
    assert out2.shape == (N, COUT, H, W), out2.shape
    assert jnp.allclose(out2, ref_nopool, atol=1e-4, rtol=1e-4), float(jnp.max(jnp.abs(out2 - ref_nopool)))

    # Default bf16 MXU path: looser tolerance (bf16 operand rounding, f32 accumulation).
    out_bf = conv_layer_forward(x, weight, bias, gamma, beta, padding=PAD, maxpool=True)
    out_bf = jax.block_until_ready(out_bf)
    assert out_bf.shape == (N, COUT, H // 2, W // 2), out_bf.shape
    assert jnp.allclose(out_bf, ref_pool, atol=5e-2, rtol=5e-2), float(jnp.max(jnp.abs(out_bf - ref_pool)))

    print("KERNEL_OK")
</pallas_src>

<mosaic_0001>
module attributes {stable_mosaic.version = 11 : i64} {
  func.func @_convlayer_fused_kernel(%arg0: i32, %arg1: memref<32x216xf32, #tpu.memory_space<vmem>>, %arg2: memref<216x128xf32, #tpu.memory_space<vmem>>, %arg3: memref<1x128xf32, #tpu.memory_space<vmem>>, %arg4: memref<1x128xf32, #tpu.memory_space<vmem>>, %arg5: memref<128x128xf32, #tpu.memory_space<vmem>>, %arg6: memref<16x64xf32, #tpu.memory_space<vmem>>) attributes {dimension_semantics = [#tpu.dimension_semantics<arbitrary>], iteration_bounds = array<i64: 1>, scalar_prefetch = 0 : i64, scratch_operands = 0 : i64, tpu.core_type = #tpu.core_type<tc>, window_params = [{pipeline_mode = #tpu.pipeline_mode<synchronous>, transform_indices = @transform_0, window_bounds = array<i64: 32, 216>}, {pipeline_mode = #tpu.pipeline_mode<synchronous>, transform_indices = @transform_1, window_bounds = array<i64: 216, 128>}, {pipeline_mode = #tpu.pipeline_mode<synchronous>, transform_indices = @transform_2, window_bounds = array<i64: 1, 128>}, {pipeline_mode = #tpu.pipeline_mode<synchronous>, transform_indices = @transform_3, window_bounds = array<i64: 1, 128>}, {pipeline_mode = #tpu.pipeline_mode<synchronous>, transform_indices = @transform_4, window_bounds = array<i64: 128, 128>}, {pipeline_mode = #tpu.pipeline_mode<synchronous>, transform_indices = @transform_5, window_bounds = array<i64: 16, 64>}]} {
    %c0 = arith.constant 0 : index
    %c0_0 = arith.constant 0 : index
    %0 = vector.load %arg1[%c0, %c0_0] : memref<32x216xf32, #tpu.memory_space<vmem>>, vector<32x216xf32>
    %c0_1 = arith.constant 0 : index
    %c0_2 = arith.constant 0 : index
    %1 = vector.load %arg2[%c0_1, %c0_2] : memref<216x128xf32, #tpu.memory_space<vmem>>, vector<216x128xf32>
    %cst = arith.constant dense<0.000000e+00> : vector<32x128xf32>
    %2 = tpu.matmul %0, %1, %cst {dimension_numbers = #tpu.dot_dimension_numbers<[1], [0], [0], [1], [0, 0, 1, 1], [], []>} : vector<32x216xf32>, vector<216x128xf32>, vector<32x128xf32> -> vector<32x128xf32>
    %cst_3 = arith.constant dense<0.000000e+00> : vector<128xf32>
    %3 = vector.multi_reduction <add>, %2, %cst_3 [0] : vector<32x128xf32> to vector<128xf32>
    %4 = vector.shape_cast %3 : vector<128xf32> to vector<1x128xf32>
    %5 = arith.mulf %2, %2 : vector<32x128xf32>
    %cst_4 = arith.constant dense<0.000000e+00> : vector<128xf32>
    %6 = vector.multi_reduction <add>, %5, %cst_4 [0] : vector<32x128xf32> to vector<128xf32>
    %7 = vector.shape_cast %6 : vector<128xf32> to vector<1x128xf32>
    %8 = tpu.concatenate %4, %7 in 0 : vector<1x128xf32>, vector<1x128xf32> -> vector<2x128xf32>
    %c0_5 = arith.constant 0 : index
    %c0_6 = arith.constant 0 : index
    %9 = vector.load %arg5[%c0_5, %c0_6] : memref<128x128xf32, #tpu.memory_space<vmem>>, vector<128x128xf32>
    %cst_7 = arith.constant dense<0.000000e+00> : vector<2x128xf32>
    %10 = tpu.matmul %8, %9, %cst_7 {dimension_numbers = #tpu.dot_dimension_numbers<[1], [0], [0], [1], [0, 0, 1, 1], [], []>} : vector<2x128xf32>, vector<128x128xf32>, vector<2x128xf32> -> vector<2x128xf32>
    %11 = vector.extract_strided_slice %10 {offsets = [0, 0], sizes = [1, 128], strides = [1, 1]} : vector<2x128xf32> to vector<1x128xf32>
    %cst_8 = arith.constant 0.001953125 : f32
    %12 = vector.broadcast %cst_8 : f32 to vector<1x128xf32>
    %13 = arith.mulf %11, %12 : vector<1x128xf32>
    %14 = vector.extract_strided_slice %10 {offsets = [1, 0], sizes = [1, 128], strides = [1, 1]} : vector<2x128xf32> to vector<1x128xf32>
    %cst_9 = arith.constant 0.001953125 : f32
    %15 = vector.broadcast %cst_9 : f32 to vector<1x128xf32>
    %16 = arith.mulf %14, %15 : vector<1x128xf32>
    %17 = arith.mulf %13, %13 : vector<1x128xf32>
    %18 = arith.subf %16, %17 : vector<1x128xf32>
    %c0_10 = arith.constant 0 : index
    %c0_11 = arith.constant 0 : index
    %19 = vector.load %arg3[%c0_10, %c0_11] : memref<1x128xf32, #tpu.memory_space<vmem>>, vector<1x128xf32>
    %cst_12 = arith.constant 9.99999974E-6 : f32
    %20 = vector.broadcast %cst_12 : f32 to vector<1x128xf32>
    %21 = arith.addf %18, %20 : vector<1x128xf32>
    %22 = math.rsqrt %21 : vector<1x128xf32>
    %23 = arith.mulf %19, %22 : vector<1x128xf32>
    %c0_13 = arith.constant 0 : index
    %c0_14 = arith.constant 0 : index
    %24 = vector.load %arg4[%c0_13, %c0_14] : memref<1x128xf32, #tpu.memory_space<vmem>>, vector<1x128xf32>
    %25 = arith.mulf %13, %23 : vector<1x128xf32>
    %26 = arith.subf %24, %25 : vector<1x128xf32>
    %27 = vector.broadcast %23 : vector<1x128xf32> to vector<32x128xf32>
    %28 = arith.mulf %2, %27 : vector<32x128xf32>
    %29 = vector.broadcast %26 : vector<1x128xf32> to vector<32x128xf32>
    %30 = arith.addf %28, %29 : vector<32x128xf32>
    %cst_15 = arith.constant 0.000000e+00 : f32
    %31 = vector.broadcast %cst_15 : f32 to vector<32x128xf32>
    %32 = arith.maximumf %30, %31 : vector<32x128xf32>
    %33 = vector.extract_strided_slice %32 {offsets = [0, 0], sizes = [32, 64], strides = [1, 1]} : vector<32x128xf32> to vector<32x64xf32>
    %34 = vector.extract_strided_slice %32 {offsets = [0, 64], sizes = [32, 64], strides = [1, 1]} : vector<32x128xf32> to vector<32x64xf32>
    %35 = arith.maximumf %33, %34 : vector<32x64xf32>
    %36 = vector.extract_strided_slice %35 {offsets = [0, 0], sizes = [16, 64], strides = [1, 1]} : vector<32x64xf32> to vector<16x64xf32>
    %37 = vector.extract_strided_slice %35 {offsets = [16, 0], sizes = [16, 64], strides = [1, 1]} : vector<32x64xf32> to vector<16x64xf32>
    %38 = arith.maximumf %36, %37 : vector<16x64xf32>
    %c0_16 = arith.constant 0 : index
    %c0_17 = arith.constant 0 : index
    %39 = vector.load %arg6[%c0_16, %c0_17] : memref<16x64xf32, #tpu.memory_space<vmem>>, vector<16x64xf32>
    tpu.vector_store %arg6[%c0_16, %c0_17], %38 {strides = array<i32>} : memref<16x64xf32, #tpu.memory_space<vmem>>, vector<16x64xf32>,
    return
  }
  func.func @transform_0(%arg0: i32) -> (i32, i32) {
    %c0_i32 = arith.constant 0 : i32
    %c0_i32_0 = arith.constant 0 : i32
    %c0_i32_1 = arith.constant 0 : i32
    return %c0_i32, %c0_i32_0 : i32, i32
  }
  func.func @transform_1(%arg0: i32) -> (i32, i32) {
    %c0_i32 = arith.constant 0 : i32
    %c0_i32_0 = arith.constant 0 : i32
    %c0_i32_1 = arith.constant 0 : i32
    return %c0_i32, %c0_i32_0 : i32, i32
  }
  func.func @transform_2(%arg0: i32) -> (i32, i32) {
    %c0_i32 = arith.constant 0 : i32
    %c0_i32_0 = arith.constant 0 : i32
    %c0_i32_1 = arith.constant 0 : i32
    return %c0_i32, %c0_i32_0 : i32, i32
  }
  func.func @transform_3(%arg0: i32) -> (i32, i32) {
    %c0_i32 = arith.constant 0 : i32
    %c0_i32_0 = arith.constant 0 : i32
    %c0_i32_1 = arith.constant 0 : i32
    return %c0_i32, %c0_i32_0 : i32, i32
  }
  func.func @transform_4(%arg0: i32) -> (i32, i32) {
    %c0_i32 = arith.constant 0 : i32
    %c0_i32_0 = arith.constant 0 : i32
    %c0_i32_1 = arith.constant 0 : i32
    return %c0_i32, %c0_i32_0 : i32, i32
  }
  func.func @transform_5(%arg0: i32) -> (i32, i32) {
    %c0_i32 = arith.constant 0 : i32
    %c0_i32_0 = arith.constant 0 : i32
    %c0_i32_1 = arith.constant 0 : i32
    return %c0_i32, %c0_i32_0 : i32, i32
  }
}

</mosaic_0001>

<bundles_post_ra>
// kernel: tile.13
= control target key start
LH: loop header
LB: loop body
LE: loop exit
PB: predicated region body
PF: predicated region fallthrough
CT: control target
= control target key end

     0   :  { %s28_s0 = inlined_call_operand.vmem [shape: f32[8], index: 0, kind: input, shape index: {}]   ;;  %s29_s1 = inlined_call_operand.vmem [shape: f32[16,8], index: 1, kind: output, shape index: {}]  }
   0x1   :  { %v4_v0 = vld [vmem:[%s28_s0] ss:$0 sm:$0xff] }
   0x2   :  { %5 = vst [vmem:[%s29_s1] sm:$0xff] %v4_v0  ;;  %8 = vst [vmem:[%s29_s1 + $0x8] sm:$0xff] %v4_v0 }

// kernel: tile.14
= control target key start
LH: loop header
LB: loop body
LE: loop exit
PB: predicated region body
PF: predicated region fallthrough
CT: control target
= control target key end

     0   :  { %s131_s10 = smov 120   ;;  %s132_s11 = smov 104   ;;  %vm3_vm0 = vcmask 64512   ;;  %vm9_vm1 = vcmask 1048512   ;;  %vm15_vm2 = vcmask 982912   ;;  %vm21_vm3 = vcmask 917312   ;;  %s207_s0 = inlined_call_operand.vmem [shape: f32[16,8], index: 0, kind: input, shape index: {}]   ;;  %s208_s1 = inlined_call_operand.vmem [shape: f32[1,128], index: 1, kind: output, shape index: {}]  }
   0x1   :  { %v101_v0 = vld [vmem:[%s207_s0 + $0xf] sm:$0x1]   ;;  %v103_v1 = vld [vmem:[%s207_s0 + $0xd] sm:$0x1]   ;;  %v102_v2 = vld [vmem:[%s207_s0 + $0xe] sm:$0x1]  }
   0x2   :  { %7 = vrot.lane.b32.xlu0 %v101_v0, %s131_s10  ;;  %19 = vrot.lane.b32.xlu1 %v103_v1, %s132_s11  ;;  %v104_v3 = vld [vmem:[%s207_s0 + $0xc] sm:$0x1]   ;;  %s133_s16 = smov 112   ;;  %s134_s17 = smov 96   ;;  %v105_v4 = vld [vmem:[%s207_s0 + $0xb] sm:$0x1]  }
   0x3   :  { %v106_v5 = vld [vmem:[%s207_s0 + $0xa] sm:$0x1]   ;;  %v2_v6 = vld [vmem:[%s207_s0] sm:$0x1]   ;;  %s135_s24 = smov 88   ;;  %s136_s25 = smov 80  }
   0x4   :  { %4 = vst.msk [vmem:[#allocation0] sm:$0x1] %vm3_vm0, %v2_v6   ;;  %v107_v7 = vld [vmem:[%s207_s0 + $0x9] sm:$0x1]   ;;  %v108_v8 = vld [vmem:[%s207_s0 + $0x8] sm:$0x1]  }
   0x5   :  { %s137_s30 = smov 72   ;;  %s138_s2 = smov 64   ;;  %v109_v9 = vld [vmem:[%s207_s0 + $0x7] sm:$0x1]   ;;  %v110_v10 = vld [vmem:[%s207_s0 + $0x6] sm:$0x1]  }
   0x6   :  { %13 = vrot.lane.b32.xlu0 %v102_v2, %s133_s16  ;;  %25 = vrot.lane.b32.xlu1 %v104_v3, %s134_s17  ;;  %s139_s7 = smov 56   ;;  %s140_s8 = smov 48   ;;  %v111_v11 = vld [vmem:[%s207_s0 + $0x5] sm:$0x1]   ;;  %v112_v12 = vld [vmem:[%s207_s0 + $0x4] sm:$0x1]  }
   0x7   :  { %s141_s13 = smov 40   ;;  %s142_s14 = smov 32   ;;  %v113_v13 = vld [vmem:[%s207_s0 + $0x3] sm:$0x1]   ;;  %v114_v14 = vld [vmem:[%s207_s0 + $0x2] sm:$0x1]  }
   0x8   :  { %s143_s19 = smov 24   ;;  %s144_s20 = smov 16   ;;  %v115_v15 = vld [vmem:[%s207_s0 + $0x1] sm:$0x1]   ;;  %vm27_vm4 = vcmask 851712   ;;  %vm33_vm5 = vcmask 786112  }
   0x9   :  { %s145_s0 = smov 8   ;;  %vm39_vm6 = vcmask 720512   ;;  %vm45_vm7 = vcmask 654912   ;;  %vm51_vm8 = vcmask 589312   ;;  %vm57_vm9 = vcmask 523712  }
   0xa   :  { %31 = vrot.lane.b32.xlu0 %v105_v4, %s135_s24  ;;  %37 = vrot.lane.b32.xlu1 %v106_v5, %s136_s25  ;;  %vm63_vm10 = vcmask 458112   ;;  %vm69_vm11 = vcmask 392512   ;;  %vm75_vm12 = vcmask 326912   ;;  %vm81_vm13 = vcmask 261312  }
   0xb   :  { %vm87_vm14 = vcmask 195712   ;;  %vm93_vm15 = vcmask 130112  }
   0xe   :  { %43 = vrot.lane.b32.xlu0 %v107_v7, %s137_s30  ;;  %49 = vrot.lane.b32.xlu1 %v108_v8, %s138_s2 }
  0x12   :  { %55 = vrot.lane.b32.xlu0 %v109_v9, %s139_s7  ;;  %61 = vrot.lane.b32.xlu1 %v110_v10, %s140_s8 }
  0x16   :  { %67 = vrot.lane.b32.xlu0 %v111_v11, %s141_s13  ;;  %73 = vrot.lane.b32.xlu1 %v112_v12, %s142_s14 }
  0x1a   :  { %79 = vrot.lane.b32.xlu0 %v113_v13, %s143_s19  ;;  %85 = vrot.lane.b32.xlu1 %v114_v14, %s144_s20 }
  0x1e   :  { %91 = vrot.lane.b32.xlu0 %v115_v15, %s145_s0 }
  0x74   :  { %v8_v16 = vpop.permute.xlu0 %7   ;;  %v20_v17 = vpop.permute.xlu1 %19  }
  0x75   :  { %10 = vst.msk [vmem:[#allocation0] sm:$0x1] %vm9_vm1, %v8_v16  }
  0x78   :  { %v14_v18 = vpop.permute.xlu0 %13   ;;  %v26_v19 = vpop.permute.xlu1 %25  }
  0x79   :  { %16 = vst.msk [vmem:[#allocation0] sm:$0x1] %vm15_vm2, %v14_v18  }
  0x7a   :  { %22 = vst.msk [vmem:[#allocation0] sm:$0x1] %vm21_vm3, %v20_v17  }
  0x7b   :  { %28 = vst.msk [vmem:[#allocation0] sm:$0x1] %vm27_vm4, %v26_v19  }
  0x7c   :  { %v32_v20 = vpop.permute.xlu0 %31   ;;  %v38_v21 = vpop.permute.xlu1 %37  }
  0x7d   :  { %34 = vst.msk [vmem:[#allocation0] sm:$0x1] %vm33_vm5, %v32_v20  }
  0x7e   :  { %40 = vst.msk [vmem:[#allocation0] sm:$0x1] %vm39_vm6, %v38_v21  }
  0x80   :  { %v44_v22 = vpop.permute.xlu0 %43   ;;  %v50_v23 = vpop.permute.xlu1 %49  }
  0x81   :  { %46 = vst.msk [vmem:[#allocation0] sm:$0x1] %vm45_vm7, %v44_v22  }
  0x82   :  { %52 = vst.msk [vmem:[#allocation0] sm:$0x1] %vm51_vm8, %v50_v23  }
  0x84   :  { %v56_v24 = vpop.permute.xlu0 %55   ;;  %v62_v25 = vpop.permute.xlu1 %61  }
  0x85   :  { %58 = vst.msk [vmem:[#allocation0] sm:$0x1] %vm57_vm9, %v56_v24  }
  0x86   :  { %64 = vst.msk [vmem:[#allocation0] sm:$0x1] %vm63_vm10, %v62_v25  }
  0x88   :  { %v68_v26 = vpop.permute.xlu0 %67   ;;  %v74_v27 = vpop.permute.xlu1 %73  }
  0x89   :  { %70 = vst.msk [vmem:[#allocation0] sm:$0x1] %vm69_vm11, %v68_v26  }
  0x8a   :  { %76 = vst.msk [vmem:[#allocation0] sm:$0x1] %vm75_vm12, %v74_v27  }
  0x8c   :  { %v80_v28 = vpop.permute.xlu0 %79   ;;  %v86_v29 = vpop.permute.xlu1 %85  }
  0x8d   :  { %82 = vst.msk [vmem:[#allocation0] sm:$0x1] %vm81_vm13, %v80_v28  }
  0x8e   :  { %88 = vst.msk [vmem:[#allocation0] sm:$0x1] %vm87_vm14, %v86_v29  }
  0x90   :  { %v92_v30 = vpop.permute.xlu0 %91  }
  0x91   :  { %94 = vst.msk [vmem:[#allocation0] sm:$0x1] %vm93_vm15, %v92_v30  }
  0x98   :  { %v98_v31 = vld [vmem:[#allocation0] sm:$0x1] }
  0x99   :  { %100 = vst [vmem:[%s208_s1] sm:$0x1] %v98_v31 }

// kernel: conv_layer_forward.1
= control target key start
LH: loop header
LB: loop body
LE: loop exit
PB: predicated region body
PF: predicated region fallthrough
CT: control target
= control target key end

     0   :  { %v472_v0 = vmov 0.0|0.0   ;;  %vm55_vm0 = vcmask 719872   ;;  %v473_v44 = vmov 0.0   ;;  %vm474_vm1 = vmmov 0   ;;  %s697_s1 = inlined_call_operand.vmem [shape: f32[216,128], index: 1, kind: input, shape index: {}]   ;;  %s698_s0 = inlined_call_operand.vmem [shape: f32[32,216], index: 0, kind: input, shape index: {}]   ;;  %s699_s4 = inlined_call_operand.vmem [shape: f32[128,128], index: 4, kind: input, shape index: {}]   ;;  %s700_s2 = inlined_call_operand.vmem [shape: f32[1,128], index: 2, kind: input, shape index: {}]   ;;  %s701_s3 = inlined_call_operand.vmem [shape: f32[1,128], index: 3, kind: input, shape index: {}]   ;;  %s702_s5 = inlined_call_operand.vmem [shape: f32[16,64], index: 5, kind: output, shape index: {}]  }
   0x1   :  { %402 = vmatprep.subr.bf16.mxu0 %v472_v0  ;;  %v28_v1 = vld [vmem:[%s697_s1] sm:$0xff]  ;;  %v29_v2 = vld [vmem:[%s697_s1 + $0x8] sm:$0xff]  ;;  %v30_v3 = vld [vmem:[%s697_s1 + $0x10] sm:$0xff]  ;;  %441 = vmatprep.subr.bf16.mxu1 %v472_v0  ;;  %vm175_vm2 = vcmask 1040384   ;;  %vm339_vm3 = vcmask 523264  }
   0x2   :  { %v403_v4 = vpack.c.bf16 %v29_v2, %v28_v1  ;;  %v31_v5 = vld [vmem:[%s697_s1 + $0x18] sm:$0xff]  ;;  %v32_v7 = vld [vmem:[%s697_s1 + $0x20] sm:$0xff]  ;;  %v33_v8 = vld [vmem:[%s697_s1 + $0x28] sm:$0xff]  ;;  %399 = vmatprep.mubr.msk.f32.mxu1 %vm474_vm1, %v473_v44 }
   0x3   :  { %v406_v6 = vpack.c.bf16 %v31_v5, %v30_v3  ;;  %v409_v9 = vpack.c.bf16 %v33_v8, %v32_v7  ;;  %v34_v10 = vld [vmem:[%s697_s1 + $0x30] sm:$0xff]  ;;  %v35_v11 = vld [vmem:[%s697_s1 + $0x38] sm:$0xff]  ;;  %v21_v12 = vld [vmem:[%s698_s0 + $0x8] sm:$0xff] }
   0x4   :  { %404 = vmatpush1.bf16.msra.mxu0 %v403_v4  ;;  %346 = vmatprep.mubr.msk.f32.mxu0 %vm55_vm0, %v21_v12  ;;  %v412_v13 = vpack.c.bf16 %v35_v11, %v34_v10  ;;  %v177_v14 = vld [vmem:[%s699_s4] sm:$0xff]  ;;  %v37_v16 = vld [vmem:[%s697_s1 + $0x48] sm:$0xff]  ;;  %v38_v20 = vld [vmem:[%s697_s1 + $0x50] sm:$0xff] }
   0x5   :  { %405 = vmatprep.subr.bf16.mxu0 %v472_v0  ;;  %v36_v15 = vld [vmem:[%s697_s1 + $0x40] sm:$0xff]  ;;  %v178_v17 = vld [vmem:[%s699_s4 + $0x8] sm:$0xff]  ;;  %v39_v21 = vld [vmem:[%s697_s1 + $0x58] sm:$0xff] }
   0x6   :  { %v442_v18 = vpack.c.bf16 %v178_v17, %v177_v14  ;;  %v415_v19 = vpack.c.bf16 %v37_v16, %v36_v15  ;;  %v418_v22 = vpack.c.bf16 %v39_v21, %v38_v20  ;;  %v40_v23 = vld [vmem:[%s697_s1 + $0x60] sm:$0xff]  ;;  %v41_v24 = vld [vmem:[%s697_s1 + $0x68] sm:$0xff]  ;;  %v42_v26 = vld [vmem:[%s697_s1 + $0x70] sm:$0xff] }
   0x7   :  { %v421_v25 = vpack.c.bf16 %v41_v24, %v40_v23  ;;  %v43_v27 = vld [vmem:[%s697_s1 + $0x78] sm:$0xff]  ;;  %v44_v29 = vld [vmem:[%s697_s1 + $0x80] sm:$0xff]  ;;  %v45_v30 = vld [vmem:[%s697_s1 + $0x88] sm:$0xff] }
   0x8   :  { %407 = vmatpush1.bf16.msra.mxu0 %v406_v6  ;;  %443 = vmatpush3.bf16.msra.mxu1 %v442_v18  ;;  %v424_v28 = vpack.c.bf16 %v43_v27, %v42_v26  ;;  %v427_v31 = vpack.c.bf16 %v45_v30, %v44_v29  ;;  %v46_v32 = vld [vmem:[%s697_s1 + $0x90] sm:$0xff]  ;;  %v47_v33 = vld [vmem:[%s697_s1 + $0x98] sm:$0xff]  ;;  %v48_v35 = vld [vmem:[%s697_s1 + $0xa0] sm:$0xff] }
   0x9   :  { %408 = vmatprep.subr.bf16.mxu0 %v472_v0  ;;  %444 = vmatprep.subr.bf16.mxu1 %v472_v0  ;;  %v430_v34 = vpack.c.bf16 %v47_v33, %v46_v32  ;;  %v49_v36 = vld [vmem:[%s697_s1 + $0xa8] sm:$0xff]  ;;  %v50_v38 = vld [vmem:[%s697_s1 + $0xb0] sm:$0xff]  ;;  %v51_v39 = vld [vmem:[%s697_s1 + $0xb8] sm:$0xff] }
   0xa   :  { %v433_v37 = vpack.c.bf16 %v49_v36, %v48_v35  ;;  %v436_v40 = vpack.c.bf16 %v51_v39, %v50_v38  ;;  %v52_v41 = vld [vmem:[%s697_s1 + $0xc0] sm:$0xff]  ;;  %v53_v42 = vld [vmem:[%s697_s1 + $0xc8] sm:$0xff]  ;;  %v54_v45 = vld [vmem:[%s697_s1 + $0xd0] sm:$0xff] }
   0xb   :  { %v439_v43 = vpack.c.bf16 %v53_v42, %v52_v41  ;;  %v20_v46 = vld [vmem:[%s698_s0] sm:$0xff]  ;;  %v23_v47 = vld [vmem:[%s698_s0 + $0x18] sm:$0xff]  ;;  %v22_v48 = vld [vmem:[%s698_s0 + $0x10] sm:$0xff] }
   0xc   :  { %410 = vmatpush1.bf16.msra.mxu0 %v409_v9  ;;  %v25_v49 = vld [vmem:[%s698_s0 + $0x28] sm:$0xff]  ;;  %v24_v50 = vld [vmem:[%s698_s0 + $0x20] sm:$0xff]  ;;  %v27_v51 = vld [vmem:[%s698_s0 + $0x38] sm:$0xff] }
   0xd   :  { %411 = vmatprep.subr.bf16.mxu0 %v472_v0  ;;  %v26_v52 = vld [vmem:[%s698_s0 + $0x30] sm:$0xff]  ;;  %v180_v54 = vld [vmem:[%s699_s4 + $0x18] sm:$0xff]  ;;  %v181_v56 = vld [vmem:[%s699_s4 + $0x20] sm:$0xff] }
   0xe   :  { %v179_v53 = vld [vmem:[%s699_s4 + $0x10] sm:$0xff]  ;;  %v182_v57 = vld [vmem:[%s699_s4 + $0x28] sm:$0xff]  ;;  %v184_v60 = vld [vmem:[%s699_s4 + $0x38] sm:$0xff] }
   0xf   :  { %v445_v55 = vpack.c.bf16 %v180_v54, %v179_v53  ;;  %v448_v58 = vpack.c.bf16 %v182_v57, %v181_v56  ;;  %v183_v59 = vld [vmem:[%s699_s4 + $0x30] sm:$0xff]  ;;  %v185_v62 = vld [vmem:[%s699_s4 + $0x40] sm:$0xff]  ;;  %v186_v63 = vld [vmem:[%s699_s4 + $0x48] sm:$0xff] }
  0x10   :  { %413 = vmatpush1.bf16.msra.mxu0 %v412_v13  ;;  %v451_v61 = vpack.c.bf16 %v184_v60, %v183_v59  ;;  %v454_v1 = vpack.c.bf16 %v186_v63, %v185_v62  ;;  %v187_v2 = vld [vmem:[%s699_s4 + $0x50] sm:$0xff]  ;;  %v188_v3 = vld [vmem:[%s699_s4 + $0x58] sm:$0xff]  ;;  %v189_v5 = vld [vmem:[%s699_s4 + $0x60] sm:$0xff] }
  0x11   :  { %414 = vmatprep.subr.bf16.mxu0 %v472_v0  ;;  %446 = vmatpush3.bf16.msra.mxu1 %v445_v55  ;;  %v457_v4 = vpack.c.bf16 %v188_v3, %v187_v2  ;;  %v190_v6 = vld [vmem:[%s699_s4 + $0x68] sm:$0xff]  ;;  %v191_v8 = vld [vmem:[%s699_s4 + $0x70] sm:$0xff]  ;;  %v192_v9 = vld [vmem:[%s699_s4 + $0x78] sm:$0xff] }
  0x12   :  { %447 = vmatprep.subr.bf16.mxu1 %v472_v0  ;;  %v460_v7 = vpack.c.bf16 %v190_v6, %v189_v5  ;;  %v463_v10 = vpack.c.bf16 %v192_v9, %v191_v8  ;;  %v269_v57 = vld [vmem:[%s700_s2] sm:$0x1]  ;;  %s476_s2 = smov 64  }
  0x14   :  { %416 = vmatpush1.bf16.msra.mxu0 %v415_v19 }
  0x15   :  { %417 = vmatprep.subr.bf16.mxu0 %v472_v0  ;;  %449 = vmatpush3.bf16.msra.mxu1 %v448_v58 }
  0x16   :  { %450 = vmatprep.subr.bf16.mxu1 %v472_v0 }
  0x18   :  { %419 = vmatpush1.bf16.msra.mxu0 %v418_v22 }
  0x19   :  { %420 = vmatprep.subr.bf16.mxu0 %v472_v0  ;;  %452 = vmatpush3.bf16.msra.mxu1 %v451_v61  ;;  %v290_v61 = vld [vmem:[%s701_s3] sm:$0x1] }
  0x1a   :  { %453 = vmatprep.subr.bf16.mxu1 %v472_v0 }
  0x1c   :  { %422 = vmatpush1.bf16.msra.mxu0 %v421_v25 }
  0x1d   :  { %423 = vmatprep.subr.bf16.mxu0 %v472_v0  ;;  %455 = vmatpush3.bf16.msra.mxu1 %v454_v1 }
  0x1e   :  { %456 = vmatprep.subr.bf16.mxu1 %v472_v0 }
  0x20   :  { %425 = vmatpush1.bf16.msra.mxu0 %v424_v28 }
  0x21   :  { %426 = vmatprep.subr.bf16.mxu0 %v472_v0  ;;  %458 = vmatpush3.bf16.msra.mxu1 %v457_v4 }
  0x22   :  { %459 = vmatprep.subr.bf16.mxu1 %v472_v0 }
  0x24   :  { %428 = vmatpush1.bf16.msra.mxu0 %v427_v31 }
  0x25   :  { %429 = vmatprep.subr.bf16.mxu0 %v472_v0  ;;  %461 = vmatpush3.bf16.msra.mxu1 %v460_v7 }
  0x26   :  { %462 = vmatprep.subr.bf16.mxu1 %v472_v0 }
  0x28   :  { %431 = vmatpush1.bf16.msra.mxu0 %v430_v34 }
  0x29   :  { %432 = vmatprep.subr.bf16.mxu0 %v472_v0  ;;  %464 = vmatpush3.bf16.msra.mxu1 %v463_v10 }
  0x2c   :  { %434 = vmatpush1.bf16.msra.mxu0 %v433_v37 }
  0x2d   :  { %435 = vmatprep.subr.bf16.mxu0 %v472_v0 }
  0x30   :  { %437 = vmatpush1.bf16.msra.mxu0 %v436_v40 }
  0x31   :  { %438 = vmatprep.subr.bf16.mxu0 %v472_v0 }
  0x34   :  { %440 = vmatpush1.bf16.msra.mxu0 %v439_v43 }
  0x35   :  { %120 = vmatprep.subr.mxu0 %v473_v44 }
  0x38   :  { %121 = vmatpush1.msra.mxu0 %v54_v45 }
  0x39   :  { %133 = vmatmul.mubr.f32.vlgmr.msra.gmra.mrb[0].mxu0 %v20_v46 }
  0x3a   :  { %347 = vmatprep.mubr.msk.f32.mxu0 %vm55_vm0, %v23_v47 }
  0x3d   :  { %138 = vmatmul.mubr.f32.gmra.mrb[2].mxu0 %v22_v48  ;;  %v475_v48 = vmov 1966171168  }
  0x3e   :  { %348 = vmatprep.mubr.msk.f32.mxu0 %vm55_vm0, %v25_v49  ;;  %v274_v49 = vunpack.c.l.s4 %v475_v48 }
  0x41   :  { %143 = vmatmul.mubr.f32.gmra.mrb[4].mxu0 %v24_v50  ;;  %v276_v50 = vlaneseq }
  0x42   :  { %349 = vmatprep.mubr.msk.f32.mxu0 %vm55_vm0, %v27_v51  ;;  %v275_v51 = vunpack.c.0.s8 %v274_v49 }
  0x45   :  { %148 = vmatmul.mubr.f32.gmra.mrb[6].mxu0 %v26_v52  ;;  %v277_v52 = vshrl.u32 %v276_v50, 7 }
  0x47   :  { %v278_v53 = vsub.s32 %v275_v51, %v277_v52  ;;  %v296_v59 = vsub.s32 0, %v277_v52 }
 0x10c   :  { %v134_v11 = vpop.f32.mrb[0].mxu0 }
 0x10d   :  { %v136_v12 = vpop.f32.mrb[1].mxu0  ;;  %v162_v14 = vmul.f32 %v134_v11, %v134_v11 }
 0x110   :  { %v139_v13 = vpop.f32.mrb[2].mxu0 }
 0x111   :  { %v153_v15 = vadd.f32 %v139_v13, %v134_v11  ;;  %v163_v16 = vmul.f32 %v139_v13, %v139_v13  ;;  %v141_v17 = vpop.f32.mrb[3].mxu0 }
 0x113   :  { %v166_v18 = vadd.f32 %v163_v16, %v162_v14 }
 0x114   :  { %v144_v19 = vpop.f32.mrb[4].mxu0 }
 0x115   :  { %v154_v20 = vadd.f32 %v153_v15, %v144_v19  ;;  %v164_v21 = vmul.f32 %v144_v19, %v144_v19  ;;  %v146_v22 = vpop.f32.mrb[5].mxu0 }
 0x117   :  { %v167_v23 = vadd.f32 %v166_v18, %v164_v21 }
 0x118   :  { %v149_v24 = vpop.f32.mrb[6].mxu0 }
 0x119   :  { %v155_v25 = vadd.f32 %v154_v20, %v149_v24  ;;  %v165_v26 = vmul.f32 %v149_v24, %v149_v24  ;;  %v151_v27 = vpop.f32.mrb[7].mxu0 }
 0x11b   :  { %v156_v28 = vrot.slane %v155_v25, 4  ;;  %v168_v0 = vadd.f32 %v167_v23, %v165_v26 }
 0x11d   :  { %v157_v29 = vadd.f32 %v156_v28, %v155_v25  ;;  %v169_v30 = vrot.slane %v168_v0, 4 }
 0x11f   :  { %v158_v31 = vrot.slane %v157_v29, 2  ;;  %v170_v32 = vadd.f32 %v169_v30, %v168_v0 }
 0x121   :  { %v159_v33 = vadd.f32 %v158_v31, %v157_v29  ;;  %v171_v34 = vrot.slane %v170_v32, 2 }
 0x123   :  { %v160_v35 = vrot.slane %v159_v33, 1  ;;  %v172_v36 = vadd.f32 %v171_v34, %v170_v32 }
 0x125   :  { %v173_v37 = vrot.slane %v172_v36, 1  ;;  %v161_v38 = vadd.f32 %v160_v35, %v159_v33 }
 0x127   :  { %v174_v39 = vadd.f32 %v173_v37, %v172_v36 }
 0x129   :  { %v176_v40 = vsel %vm175_vm2, %v161_v38, %v174_v39 }
 0x12a   :  { %400 = vmatmul.mubr.f32.vlgmr.msra.gmra.mrb[0].mxu1 %v176_v40 }
 0x1fd   :  { %v259_v41 = vpop.f32.mrb[0].mxu1 }
 0x1fe   :  { %v263_v42 = vmul.f32 0.001953125, %v259_v41  ;;  %v401_v43 = vpop.f32.mrb[1].mxu1 }
 0x200   :  { %v264_v44 = vmul.f32 %v263_v42, %v263_v42 }
 0x202   :  { %v266_v45 = vrot.slane %v264_v44, 7 }
 0x204   :  { %v268_v46 = vsub.f32 %v263_v42, %v266_v45 }
 0x206   :  { %v270_v47 = vadd.f32 1e-05, %v268_v46 }
 0x208   :  { %470 = vrsqrt.f32 %v270_v47 }
 0x212   :  { %v471_v54 = vpop.eup %470 }
 0x213   :  { %v279_v55 = vrot.slane %v471_v54, %v278_v53 }
 0x215   :  { %v280_v56 = vcombine.high %v279_v55, %v279_v55 }
 0x217   :  { %v287_v58 = vrot.slane %v280_v56, %v278_v53 }
 0x219   :  { %v289_v60 = vmul.f32 %v287_v58, %v269_v57 }
 0x21b   :  { %v291_v62 = vmul.f32 %v289_v60, %v263_v42  ;;  %v297_v63 = vrot.slane %v289_v60, %v296_v59 }
 0x21d   :  { %v292_v1 = vsub.f32 %v290_v61, %v291_v62  ;;  %v301_v2 = vmul.f32 %v297_v63, %v144_v19  ;;  %v299_v3 = vmul.f32 %v297_v63, %v134_v11  ;;  %v302_v4 = vmul.f32 %v297_v63, %v149_v24 }
 0x21e   :  { %v300_v5 = vmul.f32 %v297_v63, %v139_v13 }
 0x21f   :  { %v307_v6 = vrot.slane %v292_v1, %v296_v59 }
 0x221   :  { %v311_v7 = vadd.f32 %v307_v6, %v301_v2  ;;  %v309_v8 = vadd.f32 %v307_v6, %v299_v3  ;;  %v312_v9 = vadd.f32 %v307_v6, %v302_v4  ;;  %v310_v10 = vadd.f32 %v307_v6, %v300_v5 }
 0x223   :  { %v315_v12 = vmax.f32 %v311_v7, 0.0  ;;  %v313_v14 = vmax.f32 %v309_v8, 0.0  ;;  %v316_v15 = vmax.f32 %v312_v9, 0.0  ;;  %v314_v16 = vmax.f32 %v310_v10, 0.0 }
 0x225   :  { %325 = vrot.lane.b32.xlu1 %v315_v12, %s476_s2  ;;  %321 = vrot.lane.b32.xlu0 %v313_v14, %s476_s2 }
 0x229   :  { %327 = vrot.lane.b32.xlu1 %v316_v15, %s476_s2  ;;  %323 = vrot.lane.b32.xlu0 %v314_v16, %s476_s2 }
 0x297   :  { %v326_v17 = vpop.permute.xlu1 %325  ;;  %v322_v18 = vpop.permute.xlu0 %321 }
 0x298   :  { %v335_v19 = vmax.f32 %v315_v12, %v326_v17  ;;  %v333_v11 = vmax.f32 %v313_v14, %v322_v18 }
 0x29a   :  { %v337_v13 = vmax.f32 %v333_v11, %v335_v19 }
 0x29b   :  { %v328_v20 = vpop.permute.xlu1 %327  ;;  %v324_v21 = vpop.permute.xlu0 %323 }
 0x29c   :  { %340 = vst.msk [vmem:[%s702_s5] sm:$0xff] %vm339_vm3, %v337_v13  ;;  %v336_v22 = vmax.f32 %v316_v15, %v328_v20  ;;  %v334_v23 = vmax.f32 %v314_v16, %v324_v21 }
 0x29e   :  { %v338_v24 = vmax.f32 %v334_v23, %v336_v22 }
 0x2a0   :  { %341 = vst.msk [vmem:[%s702_s5 + $0x8] sm:$0xff] %vm339_vm3, %v338_v24 }

</bundles_post_ra>
